<compile_context>
chip_gen: v7x
topology: tpu7x:2x2x1
jax: 0.10.0
libtpu: 0.0.40
codegen_flags: <defaults>
</compile_context>

<pallas_src>
import jax
import jax.numpy as jnp
from jax import lax
from jax.experimental import pallas as pl
from jax.experimental.pallas import tpu as pltpu


def _round_up(x, m):
    return (x + m - 1) // m * m


def _bi_sim_kernel(x0_ref, m0_ref, x1_ref, m1_ref, w_ref, cos_ref,
                   acc0_ref, cnt0_ref, acc1_ref, cnt1_ref):
    """One (batch-tile, seq-tile) grid step.

    Accumulates mask-weighted sums of raw token features over the seq (reduction) axis; on the
    last seq step applies the synthetic linear encoder, masked-mean normalization, and cosine
    similarity, writing per-row cos lane-dense into cos_ref.
    """
    s = pl.program_id(1)

    @pl.when(s == 0)
    def _init():
        acc0_ref[...] = jnp.zeros_like(acc0_ref)
        cnt0_ref[...] = jnp.zeros_like(cnt0_ref)
        acc1_ref[...] = jnp.zeros_like(acc1_ref)
        cnt1_ref[...] = jnp.zeros_like(cnt1_ref)

    def _accumulate(x_ref, m_ref, acc_ref, cnt_ref):
        x = x_ref[...].astype(jnp.float32)            # [TB, TS, Hin]  (S on sublanes, Hin on lanes)
        m = m_ref[...].astype(jnp.float32)            # [TB, TS, 1]    (matching layout, lane bcast)
        acc_ref[...] += jnp.sum(x * m, axis=1)        # [TB, Hin]
        cnt_ref[...] += jnp.sum(m, axis=1)            # [TB, 1]

    _accumulate(x0_ref, m0_ref, acc0_ref, cnt0_ref)
    _accumulate(x1_ref, m1_ref, acc1_ref, cnt1_ref)

    @pl.when(s == pl.num_programs(1) - 1)
    def _finalize():
        w = w_ref[...].astype(jnp.float32)            # [Hin, H]
        # Linear stand-in encoder + masked mean pooling (MyPooling semantics):
        #   mean_s(mask * (x @ W)) == (sum_s mask*x) @ W / clamp(sum_s mask, 1e-9)
        e0 = jnp.dot(acc0_ref[...], w, preferred_element_type=jnp.float32)   # [TB, H]
        e1 = jnp.dot(acc1_ref[...], w, preferred_element_type=jnp.float32)   # [TB, H]
        e0 = e0 / jnp.maximum(cnt0_ref[...], 1e-9)    # torch.clamp(sum_mask, min=1e-9)
        e1 = e1 / jnp.maximum(cnt1_ref[...], 1e-9)

        # torch.cosine_similarity(e0, e1, dim=1, eps=1e-8), via rsqrt on the EUP slot.
        dot = jnp.sum(e0 * e1, axis=-1, keepdims=True)        # [TB, 1]
        n0sq = jnp.sum(e0 * e0, axis=-1, keepdims=True)       # [TB, 1]
        n1sq = jnp.sum(e1 * e1, axis=-1, keepdims=True)       # [TB, 1]
        eps_sq = 1e-16                                        # (eps=1e-8)**2
        cos = dot * lax.rsqrt(jnp.maximum(n0sq, eps_sq)) \
                  * lax.rsqrt(jnp.maximum(n1sq, eps_sq))      # [TB, 1]
        # Lane-dense (unmasked) store; wrapper reads column 0.
        cos_ref[...] = jnp.broadcast_to(cos, cos_ref.shape)


def bi_encoder_sim_loss(x0, m0, x1, m1, w, label, *, batch_tile=8, seq_tile=128):
    """MSE( cosine_sim(pool(enc(x0)), pool(enc(x1))), label ) — heavy work in one Pallas kernel."""
    B, S, Hin = x0.shape
    H = w.shape[1]

    TB = min(batch_tile, B)
    B_pad = _round_up(B, TB)
    TS = min(seq_tile, _round_up(S, 8))
    S_pad = _round_up(S, TS)
    Hin_pad = _round_up(Hin, 128)
    H_pad = _round_up(H, 128)

    def pad_x(x):
        return jnp.pad(x, ((0, B_pad - B), (0, S_pad - S), (0, Hin_pad - Hin)))

    def pad_m(m):
        return jnp.pad(m.reshape(B, S, 1), ((0, B_pad - B), (0, S_pad - S), (0, 0)))

    x0p, x1p = pad_x(x0), pad_x(x1)
    m0p, m1p = pad_m(m0), pad_m(m1)
    wp = jnp.pad(w, ((0, Hin_pad - Hin), (0, H_pad - H)))

    grid = (B_pad // TB, S_pad // TS)

    cos = pl.pallas_call(
        _bi_sim_kernel,
        out_shape=jax.ShapeDtypeStruct((B_pad, 128), jnp.float32),
        grid_spec=pltpu.PrefetchScalarGridSpec(
            num_scalar_prefetch=0,
            grid=grid,
            in_specs=[
                pl.BlockSpec((TB, TS, Hin_pad), lambda b, s: (b, s, 0)),   # x0 tile
                pl.BlockSpec((TB, TS, 1),       lambda b, s: (b, s, 0)),   # mask0 tile
                pl.BlockSpec((TB, TS, Hin_pad), lambda b, s: (b, s, 0)),   # x1 tile
                pl.BlockSpec((TB, TS, 1),       lambda b, s: (b, s, 0)),   # mask1 tile
                pl.BlockSpec((Hin_pad, H_pad),  lambda b, s: (0, 0)),      # encoder weight
            ],
            out_specs=pl.BlockSpec((TB, 128), lambda b, s: (b, 0)),        # per-batch cos (lane-dense)
            scratch_shapes=[
                pltpu.VMEM((TB, Hin_pad), jnp.float32),   # acc0 = sum_s mask0 * x0
                pltpu.VMEM((TB, 1), jnp.float32),         # cnt0 = sum_s mask0
                pltpu.VMEM((TB, Hin_pad), jnp.float32),   # acc1
                pltpu.VMEM((TB, 1), jnp.float32),         # cnt1
            ],
        ),
        compiler_params=pltpu.CompilerParams(
            dimension_semantics=("parallel", "arbitrary")),
    )(x0p, m0p, x1p, m1p, wp)

    cos_b = cos[:B, 0]
    diff = cos_b - label.reshape(-1).astype(jnp.float32)
    return jnp.mean(diff * diff)        # nn.MSELoss()(cos, label.view(-1))


# Pure-JAX reference for a sanity check (mirrors the PyTorch forward, 'sim' branch).
def _ref_loss(x0, m0, x1, m1, w, label):
    def pool(x, m):
        tok = jnp.einsum("bsh,hk->bsk", x.astype(jnp.float32), w.astype(jnp.float32))
        m = m.astype(jnp.float32)[..., None]
        return jnp.sum(tok * m, axis=1) / jnp.maximum(jnp.sum(m, axis=1), 1e-9)
    e0, e1 = pool(x0, m0), pool(x1, m1)
    eps = 1e-8
    cos = jnp.sum(e0 * e1, -1) / (
        jnp.maximum(jnp.linalg.norm(e0, axis=-1), eps)
        * jnp.maximum(jnp.linalg.norm(e1, axis=-1), eps))
    return jnp.mean((cos - label.astype(jnp.float32)) ** 2)


if __name__ == "__main__":
    B, S, Hin, H = 2, 8, 32, 32

    key = jax.random.PRNGKey(0)
    k0, k1, kw, kl = jax.random.split(key, 4)

    x0 = jax.random.normal(k0, (B, S, Hin), dtype=jnp.float32)
    x1 = jax.random.normal(k1, (B, S, Hin), dtype=jnp.float32)
    w = jax.random.normal(kw, (Hin, H), dtype=jnp.float32) * 0.05

    # attention masks: variable valid lengths per sequence
    pos = jnp.arange(S, dtype=jnp.int32)[None, :]
    m0 = (pos < jnp.array([S, 5], dtype=jnp.int32)[:, None]).astype(jnp.float32)
    m1 = (pos < jnp.array([6, S], dtype=jnp.int32)[:, None]).astype(jnp.float32)

    label = jax.random.uniform(kl, (B,), dtype=jnp.float32)

    loss = jax.jit(bi_encoder_sim_loss)(x0, m0, x1, m1, w, label)
    loss = jax.block_until_ready(loss)

    ref = _ref_loss(x0, m0, x1, m1, w, label)
    assert jnp.allclose(loss, ref, atol=1e-5, rtol=1e-5), (loss, ref)

    print("KERNEL_OK")
</pallas_src>

<mosaic_0001>
module attributes {stable_mosaic.version = 11 : i64} {
  func.func @_bi_sim_kernel(%arg0: i32, %arg1: i32, %arg2: memref<2x8x128xf32, #tpu.memory_space<vmem>>, %arg3: memref<2x8x1xf32, #tpu.memory_space<vmem>>, %arg4: memref<2x8x128xf32, #tpu.memory_space<vmem>>, %arg5: memref<2x8x1xf32, #tpu.memory_space<vmem>>, %arg6: memref<128x128xf32, #tpu.memory_space<vmem>>, %arg7: memref<2x128xf32, #tpu.memory_space<vmem>>, %arg8: memref<2x128xf32, #tpu.memory_space<vmem>>, %arg9: memref<2x1xf32, #tpu.memory_space<vmem>>, %arg10: memref<2x128xf32, #tpu.memory_space<vmem>>, %arg11: memref<2x1xf32, #tpu.memory_space<vmem>>) attributes {dimension_semantics = [#tpu.dimension_semantics<parallel>, #tpu.dimension_semantics<arbitrary>], iteration_bounds = array<i64: 1, 1>, scalar_prefetch = 0 : i64, scratch_operands = 4 : i64, tpu.core_type = #tpu.core_type<tc>, window_params = [{transform_indices = @transform_0, window_bounds = array<i64: 2, 8, 128>}, {transform_indices = @transform_1, window_bounds = array<i64: 2, 8, 1>}, {transform_indices = @transform_2, window_bounds = array<i64: 2, 8, 128>}, {transform_indices = @transform_3, window_bounds = array<i64: 2, 8, 1>}, {pipeline_mode = #tpu.pipeline_mode<synchronous>, transform_indices = @transform_4, window_bounds = array<i64: 128, 128>}, {transform_indices = @transform_5, window_bounds = array<i64: 2, 128>}]} {
    %c0_i32 = arith.constant 0 : i32
    %0 = arith.cmpi eq, %arg1, %c0_i32 : i32
    %1 = arith.extui %0 : i1 to i32
    %c0_i32_0 = arith.constant 0 : i32
    %2 = arith.cmpi ne, %1, %c0_i32_0 : i32
    scf.if %2 {
      %cst_33 = arith.constant 0.000000e+00 : f32
      %30 = vector.broadcast %cst_33 : f32 to vector<2x128xf32>
      %c0_34 = arith.constant 0 : index
      %c0_35 = arith.constant 0 : index
      %31 = vector.load %arg8[%c0_34, %c0_35] : memref<2x128xf32, #tpu.memory_space<vmem>>, vector<2x128xf32>
      tpu.vector_store %arg8[%c0_34, %c0_35], %30 {strides = array<i32>} : memref<2x128xf32, #tpu.memory_space<vmem>>, vector<2x128xf32>,
      %cst_36 = arith.constant 0.000000e+00 : f32
      %32 = vector.broadcast %cst_36 : f32 to vector<2x1xf32>
      %c0_37 = arith.constant 0 : index
      %c0_38 = arith.constant 0 : index
      %33 = vector.load %arg9[%c0_37, %c0_38] : memref<2x1xf32, #tpu.memory_space<vmem>>, vector<2x1xf32>
      tpu.vector_store %arg9[%c0_37, %c0_38], %32 {strides = array<i32>} : memref<2x1xf32, #tpu.memory_space<vmem>>, vector<2x1xf32>,
      %cst_39 = arith.constant 0.000000e+00 : f32
      %34 = vector.broadcast %cst_39 : f32 to vector<2x128xf32>
      %c0_40 = arith.constant 0 : index
      %c0_41 = arith.constant 0 : index
      %35 = vector.load %arg10[%c0_40, %c0_41] : memref<2x128xf32, #tpu.memory_space<vmem>>, vector<2x128xf32>
      tpu.vector_store %arg10[%c0_40, %c0_41], %34 {strides = array<i32>} : memref<2x128xf32, #tpu.memory_space<vmem>>, vector<2x128xf32>,
      %cst_42 = arith.constant 0.000000e+00 : f32
      %36 = vector.broadcast %cst_42 : f32 to vector<2x1xf32>
      %c0_43 = arith.constant 0 : index
      %c0_44 = arith.constant 0 : index
      %37 = vector.load %arg11[%c0_43, %c0_44] : memref<2x1xf32, #tpu.memory_space<vmem>>, vector<2x1xf32>
      tpu.vector_store %arg11[%c0_43, %c0_44], %36 {strides = array<i32>} : memref<2x1xf32, #tpu.memory_space<vmem>>, vector<2x1xf32>,
    } else {
    }
    %c0 = arith.constant 0 : index
    %c0_1 = arith.constant 0 : index
    %c0_2 = arith.constant 0 : index
    %3 = vector.load %arg2[%c0, %c0_1, %c0_2] : memref<2x8x128xf32, #tpu.memory_space<vmem>>, vector<2x8x128xf32>
    %c0_3 = arith.constant 0 : index
    %c0_4 = arith.constant 0 : index
    %c0_5 = arith.constant 0 : index
    %4 = vector.load %arg3[%c0_3, %c0_4, %c0_5] : memref<2x8x1xf32, #tpu.memory_space<vmem>>, vector<2x8x1xf32>
    %c0_6 = arith.constant 0 : index
    %c0_7 = arith.constant 0 : index
    %5 = vector.load %arg8[%c0_6, %c0_7] : memref<2x128xf32, #tpu.memory_space<vmem>>, vector<2x128xf32>
    %6 = vector.broadcast %4 : vector<2x8x1xf32> to vector<2x8x128xf32>
    %7 = arith.mulf %3, %6 : vector<2x8x128xf32>
    %cst = arith.constant dense<0.000000e+00> : vector<2x128xf32>
    %8 = vector.multi_reduction <add>, %7, %cst [1] : vector<2x8x128xf32> to vector<2x128xf32>
    %9 = arith.addf %5, %8 : vector<2x128xf32>
    %c0_8 = arith.constant 0 : index
    %c0_9 = arith.constant 0 : index
    %10 = vector.load %arg8[%c0_8, %c0_9] : memref<2x128xf32, #tpu.memory_space<vmem>>, vector<2x128xf32>
    tpu.vector_store %arg8[%c0_8, %c0_9], %9 {strides = array<i32>} : memref<2x128xf32, #tpu.memory_space<vmem>>, vector<2x128xf32>,
    %c0_10 = arith.constant 0 : index
    %c0_11 = arith.constant 0 : index
    %11 = vector.load %arg9[%c0_10, %c0_11] : memref<2x1xf32, #tpu.memory_space<vmem>>, vector<2x1xf32>
    %cst_12 = arith.constant dense<0.000000e+00> : vector<2x1xf32>
    %12 = vector.multi_reduction <add>, %4, %cst_12 [1] : vector<2x8x1xf32> to vector<2x1xf32>
    %13 = arith.addf %11, %12 : vector<2x1xf32>
    %c0_13 = arith.constant 0 : index
    %c0_14 = arith.constant 0 : index
    %14 = vector.load %arg9[%c0_13, %c0_14] : memref<2x1xf32, #tpu.memory_space<vmem>>, vector<2x1xf32>
    tpu.vector_store %arg9[%c0_13, %c0_14], %13 {strides = array<i32>} : memref<2x1xf32, #tpu.memory_space<vmem>>, vector<2x1xf32>,
    %c0_15 = arith.constant 0 : index
    %c0_16 = arith.constant 0 : index
    %c0_17 = arith.constant 0 : index
    %15 = vector.load %arg4[%c0_15, %c0_16, %c0_17] : memref<2x8x128xf32, #tpu.memory_space<vmem>>, vector<2x8x128xf32>
    %c0_18 = arith.constant 0 : index
    %c0_19 = arith.constant 0 : index
    %c0_20 = arith.constant 0 : index
    %16 = vector.load %arg5[%c0_18, %c0_19, %c0_20] : memref<2x8x1xf32, #tpu.memory_space<vmem>>, vector<2x8x1xf32>
    %c0_21 = arith.constant 0 : index
    %c0_22 = arith.constant 0 : index
    %17 = vector.load %arg10[%c0_21, %c0_22] : memref<2x128xf32, #tpu.memory_space<vmem>>, vector<2x128xf32>
    %18 = vector.broadcast %16 : vector<2x8x1xf32> to vector<2x8x128xf32>
    %19 = arith.mulf %15, %18 : vector<2x8x128xf32>
    %cst_23 = arith.constant dense<0.000000e+00> : vector<2x128xf32>
    %20 = vector.multi_reduction <add>, %19, %cst_23 [1] : vector<2x8x128xf32> to vector<2x128xf32>
    %21 = arith.addf %17, %20 : vector<2x128xf32>
    %c0_24 = arith.constant 0 : index
    %c0_25 = arith.constant 0 : index
    %22 = vector.load %arg10[%c0_24, %c0_25] : memref<2x128xf32, #tpu.memory_space<vmem>>, vector<2x128xf32>
    tpu.vector_store %arg10[%c0_24, %c0_25], %21 {strides = array<i32>} : memref<2x128xf32, #tpu.memory_space<vmem>>, vector<2x128xf32>,
    %c0_26 = arith.constant 0 : index
    %c0_27 = arith.constant 0 : index
    %23 = vector.load %arg11[%c0_26, %c0_27] : memref<2x1xf32, #tpu.memory_space<vmem>>, vector<2x1xf32>
    %cst_28 = arith.constant dense<0.000000e+00> : vector<2x1xf32>
    %24 = vector.multi_reduction <add>, %16, %cst_28 [1] : vector<2x8x1xf32> to vector<2x1xf32>
    %25 = arith.addf %23, %24 : vector<2x1xf32>
    %c0_29 = arith.constant 0 : index
    %c0_30 = arith.constant 0 : index
    %26 = vector.load %arg11[%c0_29, %c0_30] : memref<2x1xf32, #tpu.memory_space<vmem>>, vector<2x1xf32>
    tpu.vector_store %arg11[%c0_29, %c0_30], %25 {strides = array<i32>} : memref<2x1xf32, #tpu.memory_space<vmem>>, vector<2x1xf32>,
    %c0_i32_31 = arith.constant 0 : i32
    %27 = arith.cmpi eq, %arg1, %c0_i32_31 : i32
    %28 = arith.extui %27 : i1 to i32
    %c0_i32_32 = arith.constant 0 : i32
    %29 = arith.cmpi ne, %28, %c0_i32_32 : i32
    scf.if %29 {
      %c0_33 = arith.constant 0 : index
      %c0_34 = arith.constant 0 : index
      %30 = vector.load %arg6[%c0_33, %c0_34] : memref<128x128xf32, #tpu.memory_space<vmem>>, vector<128x128xf32>
      %c0_35 = arith.constant 0 : index
      %c0_36 = arith.constant 0 : index
      %31 = vector.load %arg8[%c0_35, %c0_36] : memref<2x128xf32, #tpu.memory_space<vmem>>, vector<2x128xf32>
      %cst_37 = arith.constant dense<0.000000e+00> : vector<2x128xf32>
      %32 = tpu.matmul %31, %30, %cst_37 {dimension_numbers = #tpu.dot_dimension_numbers<[1], [0], [0], [1], [0, 0, 1, 1], [], []>} : vector<2x128xf32>, vector<128x128xf32>, vector<2x128xf32> -> vector<2x128xf32>
      %c0_38 = arith.constant 0 : index
      %c0_39 = arith.constant 0 : index
      %33 = vector.load %arg10[%c0_38, %c0_39] : memref<2x128xf32, #tpu.memory_space<vmem>>, vector<2x128xf32>
      %cst_40 = arith.constant dense<0.000000e+00> : vector<2x128xf32>
      %34 = tpu.matmul %33, %30, %cst_40 {dimension_numbers = #tpu.dot_dimension_numbers<[1], [0], [0], [1], [0, 0, 1, 1], [], []>} : vector<2x128xf32>, vector<128x128xf32>, vector<2x128xf32> -> vector<2x128xf32>
      %c0_41 = arith.constant 0 : index
      %c0_42 = arith.constant 0 : index
      %35 = vector.load %arg9[%c0_41, %c0_42] : memref<2x1xf32, #tpu.memory_space<vmem>>, vector<2x1xf32>
      %cst_43 = arith.constant 9.99999971E-10 : f32
      %36 = vector.broadcast %cst_43 : f32 to vector<2x1xf32>
      %37 = arith.maximumf %35, %36 : vector<2x1xf32>
      %38 = vector.broadcast %37 : vector<2x1xf32> to vector<2x128xf32>
      %39 = arith.divf %32, %38 : vector<2x128xf32>
      %c0_44 = arith.constant 0 : index
      %c0_45 = arith.constant 0 : index
      %40 = vector.load %arg11[%c0_44, %c0_45] : memref<2x1xf32, #tpu.memory_space<vmem>>, vector<2x1xf32>
      %cst_46 = arith.constant 9.99999971E-10 : f32
      %41 = vector.broadcast %cst_46 : f32 to vector<2x1xf32>
      %42 = arith.maximumf %40, %41 : vector<2x1xf32>
      %43 = vector.broadcast %42 : vector<2x1xf32> to vector<2x128xf32>
      %44 = arith.divf %34, %43 : vector<2x128xf32>
      %45 = arith.mulf %39, %44 : vector<2x128xf32>
      %cst_47 = arith.constant dense<0.000000e+00> : vector<2xf32>
      %46 = vector.multi_reduction <add>, %45, %cst_47 [1] : vector<2x128xf32> to vector<2xf32>
      %47 = vector.shape_cast %46 : vector<2xf32> to vector<2x1xf32>
      %48 = arith.mulf %39, %39 : vector<2x128xf32>
      %cst_48 = arith.constant dense<0.000000e+00> : vector<2xf32>
      %49 = vector.multi_reduction <add>, %48, %cst_48 [1] : vector<2x128xf32> to vector<2xf32>
      %50 = vector.shape_cast %49 : vector<2xf32> to vector<2x1xf32>
      %51 = arith.mulf %44, %44 : vector<2x128xf32>
      %cst_49 = arith.constant dense<0.000000e+00> : vector<2xf32>
      %52 = vector.multi_reduction <add>, %51, %cst_49 [1] : vector<2x128xf32> to vector<2xf32>
      %53 = vector.shape_cast %52 : vector<2xf32> to vector<2x1xf32>
      %cst_50 = arith.constant 1.000000e-16 : f32
      %54 = vector.broadcast %cst_50 : f32 to vector<2x1xf32>
      %55 = arith.maximumf %50, %54 : vector<2x1xf32>
      %56 = math.rsqrt %55 : vector<2x1xf32>
      %57 = arith.mulf %47, %56 : vector<2x1xf32>
      %cst_51 = arith.constant 1.000000e-16 : f32
      %58 = vector.broadcast %cst_51 : f32 to vector<2x1xf32>
      %59 = arith.maximumf %53, %58 : vector<2x1xf32>
      %60 = math.rsqrt %59 : vector<2x1xf32>
      %61 = arith.mulf %57, %60 : vector<2x1xf32>
      %62 = vector.shape_cast %61 : vector<2x1xf32> to vector<2x1xf32>
      %63 = vector.broadcast %62 : vector<2x1xf32> to vector<2x128xf32>
      %c0_52 = arith.constant 0 : index
      %c0_53 = arith.constant 0 : index
      %64 = vector.load %arg7[%c0_52, %c0_53] : memref<2x128xf32, #tpu.memory_space<vmem>>, vector<2x128xf32>
      tpu.vector_store %arg7[%c0_52, %c0_53], %63 {strides = array<i32>} : memref<2x128xf32, #tpu.memory_space<vmem>>, vector<2x128xf32>,
    } else {
    }
    return
  }
  func.func @transform_0(%arg0: i32, %arg1: i32) -> (i32, i32, i32) {
    %c0_i32 = arith.constant 0 : i32
    %c0_i32_0 = arith.constant 0 : i32
    return %arg0, %arg1, %c0_i32 : i32, i32, i32
  }
  func.func @transform_1(%arg0: i32, %arg1: i32) -> (i32, i32, i32) {
    %c0_i32 = arith.constant 0 : i32
    %c0_i32_0 = arith.constant 0 : i32
    return %arg0, %arg1, %c0_i32 : i32, i32, i32
  }
  func.func @transform_2(%arg0: i32, %arg1: i32) -> (i32, i32, i32) {
    %c0_i32 = arith.constant 0 : i32
    %c0_i32_0 = arith.constant 0 : i32
    return %arg0, %arg1, %c0_i32 : i32, i32, i32
  }
  func.func @transform_3(%arg0: i32, %arg1: i32) -> (i32, i32, i32) {
    %c0_i32 = arith.constant 0 : i32
    %c0_i32_0 = arith.constant 0 : i32
    return %arg0, %arg1, %c0_i32 : i32, i32, i32
  }
  func.func @transform_4(%arg0: i32, %arg1: i32) -> (i32, i32) {
    %c0_i32 = arith.constant 0 : i32
    %c0_i32_0 = arith.constant 0 : i32
    %c0_i32_1 = arith.constant 0 : i32
    return %c0_i32, %c0_i32_0 : i32, i32
  }
  func.func @transform_5(%arg0: i32, %arg1: i32) -> (i32, i32) {
    %c0_i32 = arith.constant 0 : i32
    %c0_i32_0 = arith.constant 0 : i32
    return %arg0, %c0_i32 : i32, i32
  }
}

</mosaic_0001>

<bundles_post_ra>
// kernel: bi_encoder_sim_loss.1
= control target key start
LH: loop header
LB: loop body
LE: loop exit
PB: predicated region body
PF: predicated region fallthrough
CT: control target
= control target key end

     0   :  { %vm66_vm0 = vcmask 7168   ;;  %vm25_vm1 = vcmask 1024   ;;  %v513_v0 = vmov 0   ;;  %v514_v3 = vmov 0.0   ;;  %s656_s3 = inlined_call_operand.vmem [shape: f32[2,8,1], index: 3, kind: input, shape index: {}]   ;;  %s657_s1 = inlined_call_operand.vmem [shape: f32[2,8,1], index: 1, kind: input, shape index: {}]   ;;  %s658_s4 = inlined_call_operand.vmem [shape: f32[128,128], index: 4, kind: input, shape index: {}]   ;;  %s659_s2 = inlined_call_operand.vmem [shape: f32[2,8,128], index: 2, kind: input, shape index: {}]   ;;  %s660_s0 = inlined_call_operand.vmem [shape: f32[2,8,128], index: 0, kind: input, shape index: {}]   ;;  %s661_s5 = inlined_call_operand.vmem [shape: f32[2,128], index: 5, kind: output, shape index: {}]  }
   0x1   :  { %504 = vset.pattern.permute.xlu1 %v513_v0  ;;  %503 = vset.pattern.permute.xlu0 %v513_v0  ;;  %v90_v1 = vld [vmem:[%s656_s3] sm:$0xff]  ;;  %28 = vst.msk [vmem:[#allocation5] sm:$0x3] %vm25_vm1, %v514_v3  ;;  %v91_v4 = vld [vmem:[%s656_s3 + $0x8] sm:$0xff]  ;;  %24 = vst [vmem:[#allocation2] sm:$0x3] %v514_v3 }
   0x2   :  { %v31_v2 = vld [vmem:[%s657_s1] sm:$0xff]  ;;  %26 = vst.msk [vmem:[#allocation3] sm:$0x3] %vm25_vm1, %v514_v3  ;;  %27 = vst [vmem:[#allocation4] sm:$0x3] %v514_v3  ;;  %95 = vperm.xlu1 %504, %v90_v1   ;;  %v124_v5 = vsel %vm66_vm0, %v90_v1, 0.0 }
   0x3   :  { %36 = vperm.xlu0 %503, %v31_v2   ;;  %v67_v6 = vsel %vm66_vm0, %v31_v2, 0.0  ;;  %v131_v7 = vsel %vm66_vm0, %v91_v4, 0.0  ;;  %v32_v8 = vld [vmem:[%s657_s1 + $0x8] sm:$0xff]  ;;  %v147_v9 = vld [vmem:[%s658_s4] sm:$0xff]  ;;  %v125_v11 = vrot.slane %v124_v5, 4  ;;  %v515_v15 = vmov 0.0|0.0  }
   0x4   :  { %v148_v10 = vld [vmem:[%s658_s4 + $0x8] sm:$0xff]  ;;  %v68_v12 = vrot.slane %v67_v6, 4  ;;  %v132_v13 = vrot.slane %v131_v7, 4  ;;  %v74_v14 = vsel %vm66_vm0, %v32_v8, 0.0  ;;  %451 = vmatprep.subr.bf16.mxu0 %v515_v15  ;;  %475 = vmatprep.subr.bf16.mxu1 %v515_v15  ;;  %v149_v18 = vld [vmem:[%s658_s4 + $0x10] sm:$0xff]  ;;  %v150_v19 = vld [vmem:[%s658_s4 + $0x18] sm:$0xff] }
   0x5   :  { %v75_v16 = vrot.slane %v74_v14, 4  ;;  %v452_v17 = vpack.c.bf16 %v148_v10, %v147_v9  ;;  %v126_v20 = vadd.f32 %v125_v11, %v124_v5  ;;  %v455_v27 = vpack.c.bf16 %v150_v19, %v149_v18  ;;  %v151_v29 = vld [vmem:[%s658_s4 + $0x20] sm:$0xff]  ;;  %v152_v30 = vld [vmem:[%s658_s4 + $0x28] sm:$0xff]  ;;  %v153_v40 = vld [vmem:[%s658_s4 + $0x30] sm:$0xff] }
   0x6   :  { %v69_v21 = vadd.f32 %v68_v12, %v67_v6  ;;  %v133_v22 = vadd.f32 %v132_v13, %v131_v7  ;;  %100 = vperm.xlu1 %504, %v91_v4   ;;  %v458_v38 = vpack.c.bf16 %v152_v30, %v151_v29  ;;  %vm60_vm2 = vcmask 1041409   ;;  %v154_v41 = vld [vmem:[%s658_s4 + $0x38] sm:$0xff]  ;;  %v155_v52 = vld [vmem:[%s658_s4 + $0x40] sm:$0xff]  ;;  %v156_v53 = vld [vmem:[%s658_s4 + $0x48] sm:$0xff] }
   0x7   :  { %v76_v23 = vadd.f32 %v75_v16, %v74_v14  ;;  %41 = vperm.xlu0 %503, %v32_v8   ;;  %v127_v24 = vrot.slane %v126_v20, 2  ;;  %453 = vmatpush3.bf16.msra.mxu0 %v452_v17  ;;  %v461_v49 = vpack.c.bf16 %v154_v41, %v153_v40  ;;  %v464_v55 = vpack.c.bf16 %v156_v53, %v155_v52  ;;  %v157_v56 = vld [vmem:[%s658_s4 + $0x50] sm:$0xff]  ;;  %v158_v57 = vld [vmem:[%s658_s4 + $0x58] sm:$0xff]  ;;  %v159_v59 = vld [vmem:[%s658_s4 + $0x60] sm:$0xff] }
   0x8   :  { %v70_v25 = vrot.slane %v69_v21, 2  ;;  %v134_v26 = vrot.slane %v133_v22, 2  ;;  %477 = vmatpush3.bf16.msra.mxu1 %v452_v17  ;;  %454 = vmatprep.subr.bf16.mxu0 %v515_v15  ;;  %v123_v44 = vld [vmem:[#allocation5] sm:$0x3]  ;;  %v467_v58 = vpack.c.bf16 %v158_v57, %v157_v56  ;;  %v160_v60 = vld [vmem:[%s658_s4 + $0x68] sm:$0xff]  ;;  %v161_v2 = vld [vmem:[%s658_s4 + $0x70] sm:$0xff] }
   0x9   :  { %v77_v28 = vrot.slane %v76_v23, 2  ;;  %478 = vmatprep.subr.bf16.mxu1 %v515_v15  ;;  %v128_v31 = vadd.f32 %v127_v24, %v126_v20  ;;  %v65_v46 = vld [vmem:[#allocation3] sm:$0x3]  ;;  %v470_v1 = vpack.c.bf16 %v160_v60, %v159_v59  ;;  %v162_v4 = vld [vmem:[%s658_s4 + $0x78] sm:$0xff]  ;;  %vm516_vm3 = vmmov 0   ;;  %v89_v11 = vld [vmem:[%s659_s2 + $0x8] sm:$0xff] }
   0xa   :  { %v71_v32 = vadd.f32 %v70_v25, %v69_v21  ;;  %v135_v33 = vadd.f32 %v134_v26, %v133_v22  ;;  %413 = vmatprep.mubr.msk.f32.mxu0 %vm516_vm3, %v514_v3  ;;  %448 = vmatprep.mubr.msk.f32.mxu1 %vm516_vm3, %v514_v3  ;;  %v473_v5 = vpack.c.bf16 %v162_v4, %v161_v2  ;;  %v88_v6 = vld [vmem:[%s659_s2] sm:$0xff]  ;;  %v30_v12 = vld [vmem:[%s660_s0 + $0x8] sm:$0xff]  ;;  %vm324_vm4 = vcmask 1041408  }
   0xb   :  { %v78_v34 = vadd.f32 %v77_v28, %v76_v23  ;;  %v129_v35 = vrot.slane %v128_v31, 1  ;;  %456 = vmatpush3.bf16.msra.mxu0 %v455_v27  ;;  %v29_v7 = vld [vmem:[%s660_s0] sm:$0xff] }
   0xc   :  { %v72_v36 = vrot.slane %v71_v32, 1  ;;  %v136_v37 = vrot.slane %v135_v33, 1  ;;  %480 = vmatpush3.bf16.msra.mxu1 %v455_v27  ;;  %457 = vmatprep.subr.bf16.mxu0 %v515_v15  ;;  %v33_v41 = vld [vmem:[#allocation2] sm:$0x3] }
   0xd   :  { %v79_v39 = vrot.slane %v78_v34, 1  ;;  %481 = vmatprep.subr.bf16.mxu1 %v515_v15  ;;  %v130_v42 = vadd.f32 %v129_v35, %v128_v31 }
   0xe   :  { %v73_v43 = vadd.f32 %v72_v36, %v71_v32  ;;  %v137_v45 = vadd.f32 %v136_v37, %v135_v33 }
   0xf   :  { %v80_v47 = vadd.f32 %v79_v39, %v78_v34  ;;  %459 = vmatpush3.bf16.msra.mxu0 %v458_v38  ;;  %v92_v39 = vld [vmem:[#allocation4] sm:$0x3] }
  0x10   :  { %v140_v48 = vsel %vm60_vm2, %v137_v45, %v130_v42  ;;  %483 = vmatpush3.bf16.msra.mxu1 %v458_v38  ;;  %460 = vmatprep.subr.bf16.mxu0 %v515_v15 }
  0x11   :  { %v142_v50 = vadd.f32 %v140_v48, %v123_v44  ;;  %v83_v51 = vsel %vm60_vm2, %v80_v47, %v73_v43  ;;  %484 = vmatprep.subr.bf16.mxu1 %v515_v15 }
  0x12   :  { %v85_v54 = vadd.f32 %v83_v51, %v65_v46 }
  0x13   :  { %143 = vst.msk [vmem:[#allocation5] sm:$0x3] %vm25_vm1, %v142_v50  ;;  %462 = vmatpush3.bf16.msra.mxu0 %v461_v49 }
  0x14   :  { %87 = vst.msk [vmem:[#allocation3] sm:$0x3] %vm25_vm1, %v85_v54  ;;  %486 = vmatpush3.bf16.msra.mxu1 %v461_v49  ;;  %463 = vmatprep.subr.bf16.mxu0 %v515_v15 }
  0x15   :  { %487 = vmatprep.subr.bf16.mxu1 %v515_v15 }
  0x17   :  { %465 = vmatpush3.bf16.msra.mxu0 %v464_v55 }
  0x18   :  { %489 = vmatpush3.bf16.msra.mxu1 %v464_v55  ;;  %466 = vmatprep.subr.bf16.mxu0 %v515_v15 }
  0x19   :  { %490 = vmatprep.subr.bf16.mxu1 %v515_v15 }
  0x1a   :  { %v314_v61 = vld [vmem:[#allocation5] sm:$0x3] }
  0x1b   :  { %v315_v62 = vmax.f32 %v314_v61, 1e-09  ;;  %v305_v63 = vld [vmem:[#allocation3] sm:$0x3]  ;;  %468 = vmatpush3.bf16.msra.mxu0 %v467_v58 }
  0x1c   :  { %v306_v0 = vmax.f32 %v305_v63, 1e-09  ;;  %492 = vmatpush3.bf16.msra.mxu1 %v467_v58  ;;  %469 = vmatprep.subr.bf16.mxu0 %v515_v15 }
  0x1d   :  { %318 = vperm.xlu1 %504, %v315_v62   ;;  %493 = vmatprep.subr.bf16.mxu1 %v515_v15 }
  0x1e   :  { %309 = vperm.xlu0 %503, %v306_v0  }
  0x1f   :  { %471 = vmatpush3.bf16.msra.mxu0 %v470_v1 }
  0x20   :  { %495 = vmatpush3.bf16.msra.mxu1 %v470_v1  ;;  %472 = vmatprep.subr.bf16.mxu0 %v515_v15 }
  0x21   :  { %496 = vmatprep.subr.bf16.mxu1 %v515_v15 }
  0x23   :  { %474 = vmatpush3.bf16.msra.mxu0 %v473_v5 }
  0x24   :  { %498 = vmatpush3.bf16.msra.mxu1 %v473_v5 }
  0x81   :  { %v96_v8 = vpop.permute.xlu1 %95 }
  0x82   :  { %v37_v9 = vpop.permute.xlu0 %36  ;;  %v103_v3 = vmul.f32 %v96_v8, %v88_v6 }
  0x83   :  { %v44_v10 = vmul.f32 %v37_v9, %v29_v7 }
  0x84   :  { %v105_v13 = vrot.slane %v103_v3, 4 }
  0x85   :  { %v46_v14 = vrot.slane %v44_v10, 4  ;;  %v101_v15 = vpop.permute.xlu1 %100 }
  0x86   :  { %v42_v16 = vpop.permute.xlu0 %41  ;;  %v106_v17 = vadd.f32 %v105_v13, %v103_v3  ;;  %v104_v19 = vmul.f32 %v101_v15, %v89_v11 }
  0x87   :  { %v47_v18 = vadd.f32 %v46_v14, %v44_v10  ;;  %v45_v20 = vmul.f32 %v42_v16, %v30_v12 }
  0x88   :  { %v107_v21 = vrot.slane %v106_v17, 2  ;;  %v111_v23 = vrot.slane %v104_v19, 4 }
  0x89   :  { %v48_v22 = vrot.slane %v47_v18, 2  ;;  %v52_v24 = vrot.slane %v45_v20, 4 }
  0x8a   :  { %v108_v25 = vadd.f32 %v107_v21, %v106_v17  ;;  %v112_v27 = vadd.f32 %v111_v23, %v104_v19 }
  0x8b   :  { %v49_v26 = vadd.f32 %v48_v22, %v47_v18  ;;  %v53_v28 = vadd.f32 %v52_v24, %v45_v20 }
  0x8c   :  { %v113_v29 = vrot.slane %v112_v27, 2  ;;  %v109_v31 = vrot.slane %v108_v25, 1 }
  0x8d   :  { %v54_v30 = vrot.slane %v53_v28, 2  ;;  %v50_v32 = vrot.slane %v49_v26, 1 }
  0x8e   :  { %v114_v33 = vadd.f32 %v113_v29, %v112_v27  ;;  %v110_v37 = vadd.f32 %v109_v31, %v108_v25 }
  0x8f   :  { %v55_v34 = vadd.f32 %v54_v30, %v53_v28  ;;  %v51_v38 = vadd.f32 %v50_v32, %v49_v26 }
  0x90   :  { %v115_v35 = vrot.slane %v114_v33, 1 }
  0x91   :  { %v56_v36 = vrot.slane %v55_v34, 1 }
  0x92   :  { %v116_v40 = vadd.f32 %v115_v35, %v114_v33 }
  0x93   :  { %v57_v42 = vadd.f32 %v56_v36, %v55_v34 }
  0x94   :  { %v119_v43 = vsel %vm60_vm2, %v116_v40, %v110_v37 }
  0x95   :  { %v61_v44 = vsel %vm60_vm2, %v57_v42, %v51_v38  ;;  %v121_v45 = vadd.f32 %v119_v43, %v92_v39 }
  0x96   :  { %v63_v46 = vadd.f32 %v61_v44, %v33_v41 }
  0x97   :  { %122 = vst [vmem:[#allocation4] sm:$0x3] %v121_v45 }
  0x98   :  { %64 = vst [vmem:[#allocation2] sm:$0x3] %v63_v46 }
  0x9c   :  { %v319_v49 = vpop.permute.xlu1 %318 }
  0x9d   :  { %v310_v50 = vpop.permute.xlu0 %309  ;;  %505 = vrcp.f32 %v319_v49 }
  0x9e   :  { %v234_v48 = vld [vmem:[#allocation4] sm:$0x3]  ;;  %507 = vrcp.f32 %v310_v50 }
  0x9f   :  { %v163_v47 = vld [vmem:[#allocation2] sm:$0x3]  ;;  %449 = vmatmul.mubr.f32.vlgmr.msra.gmra.mrb[0].mxu1 %v234_v48 }
  0xa0   :  { %414 = vmatmul.mubr.f32.vlgmr.msra.gmra.mrb[0].mxu0 %v163_v47 }
  0xa7   :  { %v506_v51 = vpop.eup %505 }
  0xa8   :  { %v508_v52 = vpop.eup %507 }
 0x172   :  { %v301_v54 = vpop.f32.mrb[0].mxu1 }
 0x173   :  { %v230_v53 = vpop.f32.mrb[0].mxu0  ;;  %v322_v56 = vmul.f32 %v506_v51, %v301_v54  ;;  %v450_v58 = vpop.f32.mrb[1].mxu1 }
 0x174   :  { %v313_v55 = vmul.f32 %v508_v52, %v230_v53  ;;  %v415_v57 = vpop.f32.mrb[1].mxu0 }
 0x175   :  { %v332_v59 = vmul.f32 %v322_v56, %v322_v56 }
 0x176   :  { %v328_v60 = vmul.f32 %v313_v55, %v313_v55  ;;  %v323_v61 = vmul.f32 %v322_v56, %v313_v55 }
 0x177   :  { %v333_v62 = vsel %vm324_vm4, %v332_v59, 0.0 }
 0x178   :  { %v329_v63 = vsel %vm324_vm4, %v328_v60, 0.0  ;;  %334 = vadd.xlane.f32.xlu1 %v333_v62  ;;  %v325_v0 = vsel %vm324_vm4, %v323_v61, 0.0 }
 0x179   :  { %330 = vadd.xlane.f32.xlu0 %v329_v63 }
 0x17d   :  { %326 = vadd.xlane.f32.xlu0 %v325_v0 }
 0x205   :  { %v335_v1 = vpop.xlane.xlu1 %334 }
 0x206   :  { %v331_v2 = vpop.xlane.xlu0 %330  ;;  %v339_v5 = vmax.f32 %v335_v1, 1e-16 }
 0x207   :  { %v336_v4 = vmax.f32 %v331_v2, 1e-16 }
 0x209   :  { %509 = vrsqrt.f32 %v336_v4 }
 0x20a   :  { %511 = vrsqrt.f32 %v339_v5  ;;  %v327_v7 = vpop.xlane.xlu0 %326 }
 0x213   :  { %v510_v6 = vpop.eup %509 }
 0x214   :  { %v338_v8 = vmul.f32 %v510_v6, %v327_v7  ;;  %v512_v9 = vpop.eup %511 }
 0x216   :  { %v341_v3 = vmul.f32 %v512_v9, %v338_v8 }
 0x218   :  { %342 = vst [vmem:[%s661_s5] sm:$0x3] %v341_v3 }

</bundles_post_ra>
